<compile_context>
chip_gen: v6e
topology: v6e:2x2x1
jax: 0.10.0
libtpu: 0.0.40
codegen_flags: <defaults>
</compile_context>

<pallas_src>
import functools

import jax
import jax.numpy as jnp
from jax.experimental import pallas as pl
from jax.experimental.pallas import tpu as pltpu

# Matches torch.nn.RMSNorm(eps=None) with float32 params -> torch.finfo(float32).eps
_RMS_EPS = float(jnp.finfo(jnp.float32).eps)
_SQRT2 = 1.4142135623730951
_INV_SQRT2 = 0.7071067811865476


def _round_up(x: int, m: int) -> int:
    return ((x + m - 1) // m) * m


def _choose_pack(d_in: int, d_bot: int, d_out: int,
                 itemsize: int = 4, max_weight_bytes: int = 4 << 20) -> int:
    """Smallest row-packing factor p such that every matmul operand / output is
    lane-dense (last dim a multiple of 128 lanes), capped so the block-diagonal
    packed weights stay small.  Falls back to 1 (no packing)."""
    for p in (1, 2, 4, 8, 16, 32, 64, 128):
        if (p * d_in) % 128 or (p * d_bot) % 128 or (p * d_out) % 128:
            continue
        w_bytes = (p * d_in * p * d_bot + p * d_bot * p * d_out) * itemsize
        if w_bytes <= max_weight_bytes:
            return p
        break
    return 1


def pack_gating_params(w1, b1, g, w2, b2, pack: int):
    """One-time parameter packing (hoisted out of the per-call path).

    w1: (bottleneck, in), w2: (out, bottleneck) -- PyTorch nn.Linear layout.
    Returns block-diagonal packed, pre-transposed weights plus tiled biases and
    the block-constant matrix used for the per-group RMSNorm mean.
    """
    d_bot, d_in = w1.shape
    d_out = w2.shape[0]
    p = pack
    # Block-diagonal packed weights: group j of a packed row only touches group j.
    w1_blk = jnp.kron(jnp.eye(p, dtype=w1.dtype), jnp.transpose(w1))   # (p*d_in,  p*d_bot)
    w2_blk = jnp.kron(jnp.eye(p, dtype=w2.dtype), jnp.transpose(w2))   # (p*d_bot, p*d_out)
    # Elementwise parameters stay f32 (RMSNorm/GELU/sigmoid math is f32).
    b1_blk = jnp.tile(b1.astype(jnp.float32), p).reshape(1, p * d_bot)
    g_blk = jnp.tile(g.astype(jnp.float32), p).reshape(1, p * d_bot)
    b2_blk = jnp.tile(b2.astype(jnp.float32), p).reshape(1, p * d_out)
    # (h*h) @ rms_mat == per-group mean(h^2), broadcast back to every lane of the group.
    rms_mat = jnp.kron(jnp.eye(p, dtype=jnp.float32),
                       jnp.full((d_bot, d_bot), 1.0 / d_bot, jnp.float32))  # (p*d_bot, p*d_bot)
    return (w1_blk, b1_blk, g_blk, rms_mat, w2_blk, b2_blk)


def _gating_kernel(x_ref, w1_ref, b1_ref, g_ref, rms_ref, w2_ref, b2_ref, o_ref):
    # x tile: (tm/pack, pack*d_in) -- lane-dense packed rows.
    x = x_ref[...]

    # Linear 1 (block-diagonal packed).  Operands keep their native dtype
    # (bf16 stays bf16 on the MXU); accumulation is f32.
    h = jnp.dot(x, w1_ref[...], preferred_element_type=jnp.float32)
    h = h + b1_ref[...]

    # RMSNorm per packed group: group-mean of h^2 via a tiny block-constant matmul
    # (keeps everything lane-dense; no in-kernel reshapes; MXU is otherwise idle).
    ms = jnp.dot(h * h, rms_ref[...], preferred_element_type=jnp.float32)
    h = h * jax.lax.rsqrt(ms + _RMS_EPS) * g_ref[...]

    # GELU (exact erf form -- matches nn.GELU() default).
    h = 0.5 * h * (1.0 + jax.lax.erf(h * _INV_SQRT2))

    # Dropout: eval-mode identity.
    # TODO(synk): training-mode dropout (p=0.1) would need pltpu.prng_seed/prng_random_bits.

    # Linear 2 (block-diagonal packed) + sigmoid output gate.
    y = jnp.dot(h.astype(w2_ref.dtype), w2_ref[...], preferred_element_type=jnp.float32)
    y = y + b2_ref[...]
    o_ref[...] = jax.nn.sigmoid(y).astype(o_ref.dtype)


@functools.partial(jax.jit, static_argnames=("pack", "tm"))
def gating_forward(x, params, *, pack: int, tm: int = 1024):
    """x: (..., input_dim). params: output of pack_gating_params().

    tm = row tile (sweep 512-2048; larger, e.g. 2048-8192, on v7x's 3.2 TB/s HBM).
    """
    w1_blk, b1_blk, g_blk, rms_mat, w2_blk, b2_blk = params
    p = pack
    d_in = x.shape[-1]
    d_out = w2_blk.shape[1] // p
    lead = x.shape[:-1]

    x2 = x.reshape(-1, d_in)
    n = x2.shape[0]

    # Row-tile selection: tiles are multiples of p*8 (sublane alignment of the
    # packed view); pad the row count up and slice the result back (remainder
    # handling -- no `n % tm == 0` requirement).
    row_align = p * 8
    tm_eff = max(row_align, (tm // row_align) * row_align)
    n_align = _round_up(n, row_align)
    tm_eff = min(tm_eff, n_align)          # tiny inputs: one full-array tile
    n_pad = _round_up(n_align, tm_eff)
    if n_pad != n:
        x2 = jnp.pad(x2, ((0, n_pad - n), (0, 0)))

    # Lane-dense presentation: reinterpret (n_pad, d_in) as (n_pad/p, p*d_in).
    # Identical bytes (row-major), so this reshape is free in the wrapper.
    xp = x2.reshape(n_pad // p, p * d_in)
    tm_p = tm_eff // p

    out_p = pl.pallas_call(
        _gating_kernel,
        out_shape=jax.ShapeDtypeStruct((n_pad // p, p * d_out), x.dtype),
        grid_spec=pltpu.PrefetchScalarGridSpec(
            num_scalar_prefetch=0,
            grid=(n_pad // tm_eff,),
            in_specs=[
                pl.BlockSpec((tm_p, p * d_in), lambda i: (i, 0)),
                pl.BlockSpec(w1_blk.shape, lambda i: (0, 0)),
                pl.BlockSpec(b1_blk.shape, lambda i: (0, 0)),
                pl.BlockSpec(g_blk.shape, lambda i: (0, 0)),
                pl.BlockSpec(rms_mat.shape, lambda i: (0, 0)),
                pl.BlockSpec(w2_blk.shape, lambda i: (0, 0)),
                pl.BlockSpec(b2_blk.shape, lambda i: (0, 0)),
            ],
            out_specs=pl.BlockSpec((tm_p, p * d_out), lambda i: (i, 0)),
        ),
        compiler_params=pltpu.CompilerParams(
            dimension_semantics=("parallel",)),
    )(xp, w1_blk, b1_blk, g_blk, rms_mat, w2_blk, b2_blk)

    out = out_p.reshape(n_pad, d_out)[:n]
    return out.reshape(*lead, d_out)


def _reference(x, w1, b1, g, w2, b2):
    h = x @ w1.T + b1
    h = h * jax.lax.rsqrt(jnp.mean(h * h, axis=-1, keepdims=True) + _RMS_EPS) * g
    h = 0.5 * h * (1.0 + jax.lax.erf(h / _SQRT2))
    y = h @ w2.T + b2
    return jax.nn.sigmoid(y)


if __name__ == "__main__":
    # Module config: input_dim=32, bottleneck_factor=0.5 -> bottleneck_dim=16,
    # output_dim=input_dim=32, dropout eval-mode, GELU, RMSNorm (post-norm), sigmoid out.
    batch, seq = 2, 8
    input_dim, bottleneck_dim, output_dim = 32, 16, 32

    key = jax.random.PRNGKey(0)
    kx, kw1, kb1, kw2, kb2, kx2 = jax.random.split(key, 6)

    x = jax.random.normal(kx, (batch, seq, input_dim), dtype=jnp.float32)

    # Deterministic synthetic parameter init ("gating" init approximated by
    # small-scale normals; RMSNorm weight = ones, biases = small noise).
    w1 = jax.random.normal(kw1, (bottleneck_dim, input_dim), jnp.float32) * 0.05
    b1 = jax.random.normal(kb1, (bottleneck_dim,), jnp.float32) * 0.01
    g = jnp.ones((bottleneck_dim,), jnp.float32)
    w2 = jax.random.normal(kw2, (output_dim, bottleneck_dim), jnp.float32) * 0.05
    b2 = jax.random.normal(kb2, (output_dim,), jnp.float32) * 0.01

    pack = _choose_pack(input_dim, bottleneck_dim, output_dim)
    params = pack_gating_params(w1, b1, g, w2, b2, pack)

    out = gating_forward(x, params, pack=pack, tm=1024)
    out = jax.block_until_ready(out)
    ref = _reference(x, w1, b1, g, w2, b2)
    assert out.shape == (batch, seq, output_dim)
    err = float(jnp.max(jnp.abs(out - ref)))
    assert jnp.allclose(out, ref, atol=1e-4, rtol=1e-4), f"mismatch vs reference, max|err|={err}"

    # Second check: row count not a multiple of the tile (exercises padding) and a
    # multi-step grid (tm=64 -> 2 grid steps for 111 rows).
    x2v = jax.random.normal(kx2, (3, 37, input_dim), jnp.float32)
    out2 = jax.block_until_ready(gating_forward(x2v, params, pack=pack, tm=64))
    ref2 = _reference(x2v, w1, b1, g, w2, b2)
    assert out2.shape == (3, 37, output_dim)
    assert jnp.allclose(out2, ref2, atol=1e-4, rtol=1e-4), "mismatch vs reference (padded/tiled case)"

    print("KERNEL_OK")
</pallas_src>

<mosaic_0001>
module attributes {stable_mosaic.version = 11 : i64} {
  func.func @_gating_kernel(%arg0: i32, %arg1: memref<8x256xf32, #tpu.memory_space<vmem>>, %arg2: memref<256x128xf32, #tpu.memory_space<vmem>>, %arg3: memref<1x128xf32, #tpu.memory_space<vmem>>, %arg4: memref<1x128xf32, #tpu.memory_space<vmem>>, %arg5: memref<128x128xf32, #tpu.memory_space<vmem>>, %arg6: memref<128x256xf32, #tpu.memory_space<vmem>>, %arg7: memref<1x256xf32, #tpu.memory_space<vmem>>, %arg8: memref<8x256xf32, #tpu.memory_space<vmem>>) attributes {dimension_semantics = [#tpu.dimension_semantics<parallel>], iteration_bounds = array<i64: 1>, scalar_prefetch = 0 : i64, scratch_operands = 0 : i64, tpu.core_type = #tpu.core_type<tc>, window_params = [{transform_indices = @transform_0, window_bounds = array<i64: 8, 256>}, {pipeline_mode = #tpu.pipeline_mode<synchronous>, transform_indices = @transform_1, window_bounds = array<i64: 256, 128>}, {pipeline_mode = #tpu.pipeline_mode<synchronous>, transform_indices = @transform_2, window_bounds = array<i64: 1, 128>}, {pipeline_mode = #tpu.pipeline_mode<synchronous>, transform_indices = @transform_3, window_bounds = array<i64: 1, 128>}, {pipeline_mode = #tpu.pipeline_mode<synchronous>, transform_indices = @transform_4, window_bounds = array<i64: 128, 128>}, {pipeline_mode = #tpu.pipeline_mode<synchronous>, transform_indices = @transform_5, window_bounds = array<i64: 128, 256>}, {pipeline_mode = #tpu.pipeline_mode<synchronous>, transform_indices = @transform_6, window_bounds = array<i64: 1, 256>}, {transform_indices = @transform_7, window_bounds = array<i64: 8, 256>}]} {
    %c0 = arith.constant 0 : index
    %c0_0 = arith.constant 0 : index
    %0 = vector.load %arg1[%c0, %c0_0] : memref<8x256xf32, #tpu.memory_space<vmem>>, vector<8x256xf32>
    %c0_1 = arith.constant 0 : index
    %c0_2 = arith.constant 0 : index
    %1 = vector.load %arg2[%c0_1, %c0_2] : memref<256x128xf32, #tpu.memory_space<vmem>>, vector<256x128xf32>
    %cst = arith.constant dense<0.000000e+00> : vector<8x128xf32>
    %2 = tpu.matmul %0, %1, %cst {dimension_numbers = #tpu.dot_dimension_numbers<[1], [0], [0], [1], [0, 0, 1, 1], [], []>} : vector<8x256xf32>, vector<256x128xf32>, vector<8x128xf32> -> vector<8x128xf32>
    %c0_3 = arith.constant 0 : index
    %c0_4 = arith.constant 0 : index
    %3 = vector.load %arg3[%c0_3, %c0_4] : memref<1x128xf32, #tpu.memory_space<vmem>>, vector<1x128xf32>
    %4 = vector.broadcast %3 : vector<1x128xf32> to vector<8x128xf32>
    %5 = arith.addf %2, %4 : vector<8x128xf32>
    %6 = arith.mulf %5, %5 : vector<8x128xf32>
    %c0_5 = arith.constant 0 : index
    %c0_6 = arith.constant 0 : index
    %7 = vector.load %arg5[%c0_5, %c0_6] : memref<128x128xf32, #tpu.memory_space<vmem>>, vector<128x128xf32>
    %cst_7 = arith.constant dense<0.000000e+00> : vector<8x128xf32>
    %8 = tpu.matmul %6, %7, %cst_7 {dimension_numbers = #tpu.dot_dimension_numbers<[1], [0], [0], [1], [0, 0, 1, 1], [], []>} : vector<8x128xf32>, vector<128x128xf32>, vector<8x128xf32> -> vector<8x128xf32>
    %cst_8 = arith.constant 1.1920929E-7 : f32
    %9 = vector.broadcast %cst_8 : f32 to vector<8x128xf32>
    %10 = arith.addf %8, %9 : vector<8x128xf32>
    %11 = math.rsqrt %10 : vector<8x128xf32>
    %12 = arith.mulf %5, %11 : vector<8x128xf32>
    %c0_9 = arith.constant 0 : index
    %c0_10 = arith.constant 0 : index
    %13 = vector.load %arg4[%c0_9, %c0_10] : memref<1x128xf32, #tpu.memory_space<vmem>>, vector<1x128xf32>
    %14 = vector.broadcast %13 : vector<1x128xf32> to vector<8x128xf32>
    %15 = arith.mulf %12, %14 : vector<8x128xf32>
    %cst_11 = arith.constant 5.000000e-01 : f32
    %16 = vector.broadcast %cst_11 : f32 to vector<8x128xf32>
    %17 = arith.mulf %16, %15 : vector<8x128xf32>
    %cst_12 = arith.constant 0.707106769 : f32
    %18 = vector.broadcast %cst_12 : f32 to vector<8x128xf32>
    %19 = arith.mulf %15, %18 : vector<8x128xf32>
    %20 = math.erf %19 : vector<8x128xf32>
    %cst_13 = arith.constant 1.000000e+00 : f32
    %21 = vector.broadcast %cst_13 : f32 to vector<8x128xf32>
    %22 = arith.addf %21, %20 : vector<8x128xf32>
    %23 = arith.mulf %17, %22 : vector<8x128xf32>
    %c0_14 = arith.constant 0 : index
    %c0_15 = arith.constant 0 : index
    %24 = vector.load %arg6[%c0_14, %c0_15] : memref<128x256xf32, #tpu.memory_space<vmem>>, vector<128x256xf32>
    %cst_16 = arith.constant dense<0.000000e+00> : vector<8x256xf32>
    %25 = tpu.matmul %23, %24, %cst_16 {dimension_numbers = #tpu.dot_dimension_numbers<[1], [0], [0], [1], [0, 0, 1, 1], [], []>} : vector<8x128xf32>, vector<128x256xf32>, vector<8x256xf32> -> vector<8x256xf32>
    %c0_17 = arith.constant 0 : index
    %c0_18 = arith.constant 0 : index
    %26 = vector.load %arg7[%c0_17, %c0_18] : memref<1x256xf32, #tpu.memory_space<vmem>>, vector<1x256xf32>
    %27 = vector.broadcast %26 : vector<1x256xf32> to vector<8x256xf32>
    %28 = arith.addf %25, %27 : vector<8x256xf32>
    %29 = arith.negf %28 : vector<8x256xf32>
    %30 = math.exp %29 : vector<8x256xf32>
    %cst_19 = arith.constant 1.000000e+00 : f32
    %31 = vector.broadcast %cst_19 : f32 to vector<8x256xf32>
    %32 = arith.addf %31, %30 : vector<8x256xf32>
    %33 = arith.divf %31, %32 : vector<8x256xf32>
    %c0_20 = arith.constant 0 : index
    %c0_21 = arith.constant 0 : index
    %34 = vector.load %arg8[%c0_20, %c0_21] : memref<8x256xf32, #tpu.memory_space<vmem>>, vector<8x256xf32>
    tpu.vector_store %arg8[%c0_20, %c0_21], %33 {strides = array<i32>} : memref<8x256xf32, #tpu.memory_space<vmem>>, vector<8x256xf32>,
    return
  }
  func.func @transform_0(%arg0: i32) -> (i32, i32) {
    %c0_i32 = arith.constant 0 : i32
    %c0_i32_0 = arith.constant 0 : i32
    return %arg0, %c0_i32 : i32, i32
  }
  func.func @transform_1(%arg0: i32) -> (i32, i32) {
    %c0_i32 = arith.constant 0 : i32
    %c0_i32_0 = arith.constant 0 : i32
    %c0_i32_1 = arith.constant 0 : i32
    return %c0_i32, %c0_i32_0 : i32, i32
  }
  func.func @transform_2(%arg0: i32) -> (i32, i32) {
    %c0_i32 = arith.constant 0 : i32
    %c0_i32_0 = arith.constant 0 : i32
    %c0_i32_1 = arith.constant 0 : i32
    return %c0_i32, %c0_i32_0 : i32, i32
  }
  func.func @transform_3(%arg0: i32) -> (i32, i32) {
    %c0_i32 = arith.constant 0 : i32
    %c0_i32_0 = arith.constant 0 : i32
    %c0_i32_1 = arith.constant 0 : i32
    return %c0_i32, %c0_i32_0 : i32, i32
  }
  func.func @transform_4(%arg0: i32) -> (i32, i32) {
    %c0_i32 = arith.constant 0 : i32
    %c0_i32_0 = arith.constant 0 : i32
    %c0_i32_1 = arith.constant 0 : i32
    return %c0_i32, %c0_i32_0 : i32, i32
  }
  func.func @transform_5(%arg0: i32) -> (i32, i32) {
    %c0_i32 = arith.constant 0 : i32
    %c0_i32_0 = arith.constant 0 : i32
    %c0_i32_1 = arith.constant 0 : i32
    return %c0_i32, %c0_i32_0 : i32, i32
  }
  func.func @transform_6(%arg0: i32) -> (i32, i32) {
    %c0_i32 = arith.constant 0 : i32
    %c0_i32_0 = arith.constant 0 : i32
    %c0_i32_1 = arith.constant 0 : i32
    return %c0_i32, %c0_i32_0 : i32, i32
  }
  func.func @transform_7(%arg0: i32) -> (i32, i32) {
    %c0_i32 = arith.constant 0 : i32
    %c0_i32_0 = arith.constant 0 : i32
    return %arg0, %c0_i32 : i32, i32
  }
}

</mosaic_0001>

<bundles_post_ra>
// kernel: gating_forward.1
= control target key start
LH: loop header
LB: loop body
LE: loop exit
PB: predicated region body
PF: predicated region fallthrough
CT: control target
= control target key end

     0   :  { %12 = vsyncpa [#allocation3], 0  ;;  %s703_s0 = inlined_call_operand.vmem [shape: f32[8,256], index: 0, kind: input, shape index: {}]   ;;  %s704_s1 = inlined_call_operand.hbm [shape: f32[256,128], index: 1, kind: input, shape index: {}]   ;;  %s705_s2 = inlined_call_operand.vmem [shape: f32[1,128], index: 2, kind: input, shape index: {}]   ;;  %s706_s3 = inlined_call_operand.vmem [shape: f32[1,128], index: 3, kind: input, shape index: {}]   ;;  %s707_s4 = inlined_call_operand.vmem [shape: f32[128,128], index: 4, kind: input, shape index: {}]   ;;  %s708_s5 = inlined_call_operand.hbm [shape: f32[128,256], index: 5, kind: input, shape index: {}]   ;;  %s709_s6 = inlined_call_operand.vmem [shape: f32[1,256], index: 6, kind: input, shape index: {}]   ;;  %s710_s7 = inlined_call_operand.vmem [shape: f32[8,256], index: 7, kind: output, shape index: {}]  }
   0x1   :  { %13 = vsyncpa [#allocation5], 0  ;;  %s557_s24 = smov [#allocation2]  }
   0x2   :  { %s21_s25 = sshll.u32 %s557_s24, 4  ;;  %s22_s25 = int_to_ptr.vmem [resolvable:$true] %s21_s25 }
   0x3   :  { %s521_s26 = scalar_lea.vmem %s22_s25, 4096  ;;  %p526_p1 = scmp.lt.s32.totalorder %s22_s25, %s22_s25 }
   0x4   :  { %p522_p0 = scmp.ne.s32.totalorder %s22_s25, %s521_s26  ;;  %p527_p2 = scmp.lt.s32.totalorder %s521_s26, %s521_s26 }
   0x6   :  { %p528_p3 = por %p527_p2, %p526_p1 }
   0x8   :  { %p529_p4 = pnand %p528_p3, %p522_p0 }
   0xa   :  { %532 = shalt.err (!%p529_p4)
}
   0xb   :  { %s558_s27 = smov 128   ;;  %s559_s28 = smov 8  }
   0xc   :  { %27 = dma.hbm_to_vmem [thread:$0]  %s704_s1, 4096, %s22_s25, [#allocation3], %s558_s27, %s558_s27, %s559_s28  }
   0xd   :  { %s560_s8 = smov [#allocation4]  }
   0xe   :  { %s39_s9 = sshll.u32 %s560_s8, 4  ;;  %s40_s9 = int_to_ptr.vmem [resolvable:$true] %s39_s9 }
   0xf   :  { %s541_s10 = scalar_lea.vmem %s40_s9, 4096  ;;  %p546_p6 = scmp.lt.s32.totalorder %s40_s9, %s40_s9 }
  0x10   :  { %p542_p5 = scmp.ne.s32.totalorder %s40_s9, %s541_s10  ;;  %p547_p7 = scmp.lt.s32.totalorder %s541_s10, %s541_s10 }
  0x12   :  { %p548_p8 = por %p547_p7, %p546_p6 }
  0x14   :  { %p549_p9 = pnand %p548_p8, %p542_p5 }
  0x16   :  { %552 = shalt.err (!%p549_p9)
}
  0x17   :  { %s561_s11 = smov 256   ;;  %s562_s12 = smov 16  }
  0x18   :  { %45 = dma.hbm_to_vmem [thread:$0]  %s708_s5, 4096, %s40_s9, [#allocation5], %s561_s11, %s561_s11, %s562_s12  }
  0x19   :  { %553 = dma.done.wait [#allocation3], 4096  }
  0x1a   :  { %554 = vsyncadd [#allocation3], 4294963200 }
  0x1b   :  { %555 = dma.done.wait [#allocation5], 4096  }
  0x1c   :  { %556 = vsyncadd [#allocation5], 4294963200  ;;  %v563_v0 = vmov 0.0   ;;  %v87_v1 = vld [vmem:[#allocation2 + $0xf8] sm:$0xff]  ;;  %v86_v3 = vld [vmem:[#allocation2 + $0xf0] sm:$0xff]  ;;  %vm564_vm0 = vmmov 0  }
  0x1d   :  { %458 = vmatprep.subr.mxu1 %v563_v0  ;;  %v71_v2 = vld [vmem:[#allocation2 + $0x78] sm:$0xff]  ;;  %406 = vmatprep.subr.mxu0 %v87_v1  ;;  %v70_v4 = vld [vmem:[#allocation2 + $0x70] sm:$0xff]  ;;  %v85_v5 = vld [vmem:[#allocation2 + $0xe8] sm:$0xff] }
  0x1e   :  { %407 = vmatpush3.msra.mxu0 %v71_v2  ;;  %v69_v6 = vld [vmem:[#allocation2 + $0x68] sm:$0xff]  ;;  %v84_v7 = vld [vmem:[#allocation2 + $0xe0] sm:$0xff]  ;;  %v83_v9 = vld [vmem:[#allocation2 + $0xd8] sm:$0xff]  ;;  %490 = vmatprep.mubr.msk.f32.mxu1 %vm564_vm0, %v563_v0 }
  0x1f   :  { %408 = vmatprep.subr.mxu0 %v86_v3  ;;  %v68_v8 = vld [vmem:[#allocation2 + $0x60] sm:$0xff]  ;;  %v67_v10 = vld [vmem:[#allocation2 + $0x58] sm:$0xff]  ;;  %v82_v11 = vld [vmem:[#allocation2 + $0xd0] sm:$0xff] }
  0x20   :  { %409 = vmatpush3.msra.mxu0 %v70_v4  ;;  %v66_v12 = vld [vmem:[#allocation2 + $0x50] sm:$0xff]  ;;  %v81_v13 = vld [vmem:[#allocation2 + $0xc8] sm:$0xff]  ;;  %v181_v16 = vld [vmem:[%s707_s4 + $0x78] sm:$0xff] }
  0x21   :  { %410 = vmatprep.subr.mxu0 %v85_v5  ;;  %v55_v14 = vld [vmem:[%s703_s0 + $0x8] sm:$0xff]  ;;  %v180_v17 = vld [vmem:[%s707_s4 + $0x70] sm:$0xff]  ;;  %v80_v18 = vld [vmem:[#allocation2 + $0xc0] sm:$0xff]  ;;  %459 = vmatpush3.msra.mxu1 %v181_v16 }
  0x22   :  { %411 = vmatpush3.msra.mxu0 %v69_v6  ;;  %v65_v15 = vld [vmem:[#allocation2 + $0x48] sm:$0xff]  ;;  %159 = vmatprep.mubr.f32.mxu0 %v55_v14  ;;  %v64_v19 = vld [vmem:[#allocation2 + $0x40] sm:$0xff]  ;;  %v79_v21 = vld [vmem:[#allocation2 + $0xb8] sm:$0xff] }
  0x23   :  { %412 = vmatprep.subr.mxu0 %v84_v7  ;;  %460 = vmatprep.subr.mxu1 %v563_v0  ;;  %v179_v20 = vld [vmem:[%s707_s4 + $0x68] sm:$0xff]  ;;  %v63_v22 = vld [vmem:[#allocation2 + $0x38] sm:$0xff]  ;;  %v178_v23 = vld [vmem:[%s707_s4 + $0x60] sm:$0xff] }
  0x24   :  { %413 = vmatpush3.msra.mxu0 %v68_v8  ;;  %461 = vmatpush3.msra.mxu1 %v180_v17  ;;  %v78_v24 = vld [vmem:[#allocation2 + $0xb0] sm:$0xff]  ;;  %v177_v26 = vld [vmem:[%s707_s4 + $0x58] sm:$0xff]  ;;  %v77_v27 = vld [vmem:[#allocation2 + $0xa8] sm:$0xff] }
  0x25   :  { %414 = vmatprep.subr.mxu0 %v83_v9  ;;  %462 = vmatprep.subr.mxu1 %v563_v0  ;;  %v62_v25 = vld [vmem:[#allocation2 + $0x30] sm:$0xff]  ;;  %v61_v28 = vld [vmem:[#allocation2 + $0x28] sm:$0xff]  ;;  %v76_v30 = vld [vmem:[#allocation2 + $0xa0] sm:$0xff] }
  0x26   :  { %415 = vmatpush3.msra.mxu0 %v67_v10  ;;  %463 = vmatpush3.msra.mxu1 %v179_v20  ;;  %v176_v29 = vld [vmem:[%s707_s4 + $0x50] sm:$0xff]  ;;  %v60_v31 = vld [vmem:[#allocation2 + $0x20] sm:$0xff]  ;;  %v175_v32 = vld [vmem:[%s707_s4 + $0x48] sm:$0xff] }
  0x27   :  { %416 = vmatprep.subr.mxu0 %v82_v11  ;;  %464 = vmatprep.subr.mxu1 %v563_v0  ;;  %v75_v33 = vld [vmem:[#allocation2 + $0x98] sm:$0xff]  ;;  %v174_v35 = vld [vmem:[%s707_s4 + $0x40] sm:$0xff]  ;;  %v74_v36 = vld [vmem:[#allocation2 + $0x90] sm:$0xff] }
  0x28   :  { %417 = vmatpush3.msra.mxu0 %v66_v12  ;;  %465 = vmatpush3.msra.mxu1 %v178_v23  ;;  %v59_v34 = vld [vmem:[#allocation2 + $0x18] sm:$0xff]  ;;  %v58_v37 = vld [vmem:[#allocation2 + $0x10] sm:$0xff]  ;;  %v73_v39 = vld [vmem:[#allocation2 + $0x88] sm:$0xff] }
  0x29   :  { %418 = vmatprep.subr.mxu0 %v81_v13  ;;  %466 = vmatprep.subr.mxu1 %v563_v0  ;;  %v173_v38 = vld [vmem:[%s707_s4 + $0x38] sm:$0xff]  ;;  %v57_v40 = vld [vmem:[#allocation2 + $0x8] sm:$0xff]  ;;  %v172_v41 = vld [vmem:[%s707_s4 + $0x30] sm:$0xff] }
  0x2a   :  { %419 = vmatpush3.msra.mxu0 %v65_v15  ;;  %467 = vmatpush3.msra.mxu1 %v177_v26  ;;  %v72_v42 = vld [vmem:[#allocation2 + $0x80] sm:$0xff]  ;;  %v171_v44 = vld [vmem:[%s707_s4 + $0x28] sm:$0xff]  ;;  %v169_v47 = vld [vmem:[%s707_s4 + $0x18] sm:$0xff] }
  0x2b   :  { %420 = vmatprep.subr.mxu0 %v80_v18  ;;  %468 = vmatprep.subr.mxu1 %v563_v0  ;;  %v56_v43 = vld [vmem:[#allocation2] sm:$0xff]  ;;  %v168_v48 = vld [vmem:[%s707_s4 + $0x10] sm:$0xff]  ;;  %v167_v49 = vld [vmem:[%s707_s4 + $0x8] sm:$0xff] }
  0x2c   :  { %421 = vmatpush3.msra.mxu0 %v64_v19  ;;  %469 = vmatpush3.msra.mxu1 %v176_v29  ;;  %v54_v45 = vld [vmem:[%s703_s0] sm:$0xff]  ;;  %v298_v57 = vld [vmem:[#allocation4 + $0xf8] sm:$0xff]  ;;  %v297_v58 = vld [vmem:[#allocation4 + $0xf0] sm:$0xff] }
  0x2d   :  { %422 = vmatprep.subr.mxu0 %v79_v21  ;;  %470 = vmatprep.subr.mxu1 %v563_v0  ;;  %v170_v46 = vld [vmem:[%s707_s4 + $0x20] sm:$0xff]  ;;  %v296_v59 = vld [vmem:[#allocation4 + $0xe8] sm:$0xff]  ;;  %v294_v61 = vld [vmem:[#allocation4 + $0xd8] sm:$0xff] }
  0x2e   :  { %423 = vmatpush3.msra.mxu0 %v63_v22  ;;  %471 = vmatpush3.msra.mxu1 %v175_v32  ;;  %v166_v50 = vld [vmem:[%s707_s4] sm:$0xff]  ;;  %v293_v62 = vld [vmem:[#allocation4 + $0xd0] sm:$0xff]  ;;  %v292_v63 = vld [vmem:[#allocation4 + $0xc8] sm:$0xff] }
  0x2f   :  { %424 = vmatprep.subr.mxu0 %v78_v24  ;;  %472 = vmatprep.subr.mxu1 %v563_v0  ;;  %v402_v52 = vld [vmem:[%s705_s2] ss:$0 sm:$0xff]  ;;  %v290_v1 = vld [vmem:[#allocation4 + $0xb8] sm:$0xff]  ;;  %v289_v2 = vld [vmem:[#allocation4 + $0xb0] sm:$0xff] }
  0x30   :  { %425 = vmatpush3.msra.mxu0 %v62_v25  ;;  %473 = vmatpush3.msra.mxu1 %v174_v35  ;;  %v295_v60 = vld [vmem:[#allocation4 + $0xe0] sm:$0xff]  ;;  %v288_v3 = vld [vmem:[#allocation4 + $0xa8] sm:$0xff]  ;;  %v286_v5 = vld [vmem:[#allocation4 + $0x98] sm:$0xff] }
  0x31   :  { %426 = vmatprep.subr.mxu0 %v77_v27  ;;  %474 = vmatprep.subr.mxu1 %v563_v0  ;;  %v287_v4 = vld [vmem:[#allocation4 + $0xa0] sm:$0xff]  ;;  %v285_v6 = vld [vmem:[#allocation4 + $0x90] sm:$0xff]  ;;  %v284_v7 = vld [vmem:[#allocation4 + $0x88] sm:$0xff] }
  0x32   :  { %427 = vmatpush3.msra.mxu0 %v61_v28  ;;  %475 = vmatpush3.msra.mxu1 %v173_v38  ;;  %v283_v8 = vld [vmem:[#allocation4 + $0x80] sm:$0xff]  ;;  %v282_v9 = vld [vmem:[#allocation4 + $0x78] sm:$0xff]  ;;  %v281_v10 = vld [vmem:[#allocation4 + $0x70] sm:$0xff] }
  0x33   :  { %428 = vmatprep.subr.mxu0 %v76_v30  ;;  %476 = vmatprep.subr.mxu1 %v563_v0  ;;  %v280_v11 = vld [vmem:[#allocation4 + $0x68] sm:$0xff]  ;;  %v279_v12 = vld [vmem:[#allocation4 + $0x60] sm:$0xff]  ;;  %v278_v13 = vld [vmem:[#allocation4 + $0x58] sm:$0xff] }
  0x34   :  { %429 = vmatpush3.msra.mxu0 %v60_v31  ;;  %477 = vmatpush3.msra.mxu1 %v172_v41  ;;  %v277_v14 = vld [vmem:[#allocation4 + $0x50] sm:$0xff]  ;;  %v276_v15 = vld [vmem:[#allocation4 + $0x48] sm:$0xff]  ;;  %v275_v16 = vld [vmem:[#allocation4 + $0x40] sm:$0xff] }
  0x35   :  { %430 = vmatprep.subr.mxu0 %v75_v33  ;;  %478 = vmatprep.subr.mxu1 %v563_v0  ;;  %v274_v17 = vld [vmem:[#allocation4 + $0x38] sm:$0xff]  ;;  %v273_v18 = vld [vmem:[#allocation4 + $0x30] sm:$0xff]  ;;  %v272_v19 = vld [vmem:[#allocation4 + $0x28] sm:$0xff] }
  0x36   :  { %431 = vmatpush3.msra.mxu0 %v59_v34  ;;  %479 = vmatpush3.msra.mxu1 %v171_v44  ;;  %v271_v20 = vld [vmem:[#allocation4 + $0x20] sm:$0xff]  ;;  %v270_v21 = vld [vmem:[#allocation4 + $0x18] sm:$0xff]  ;;  %v269_v22 = vld [vmem:[#allocation4 + $0x10] sm:$0xff] }
  0x37   :  { %432 = vmatprep.subr.mxu0 %v74_v36  ;;  %480 = vmatprep.subr.mxu1 %v563_v0  ;;  %v268_v23 = vld [vmem:[#allocation4 + $0x8] sm:$0xff]  ;;  %v267_v24 = vld [vmem:[#allocation4] sm:$0xff] }
  0x38   :  { %433 = vmatpush3.msra.mxu0 %v58_v37  ;;  %481 = vmatpush3.msra.mxu1 %v170_v46  ;;  %v403_v29 = vld [vmem:[%s706_s3] ss:$0 sm:$0xff]  ;;  %v301_v37 = vlaneseq }
  0x39   :  { %434 = vmatprep.subr.mxu0 %v73_v39  ;;  %482 = vmatprep.subr.mxu1 %v563_v0 }
  0x3a   :  { %435 = vmatpush3.msra.mxu0 %v57_v40  ;;  %483 = vmatpush3.msra.mxu1 %v169_v47  ;;  %v302_v38 = vshrl.u32 %v301_v37, 7  ;;  %v299_v40 = vld [vmem:[%s709_s6] sm:$0x3] }
  0x3b   :  { %436 = vmatprep.subr.mxu0 %v72_v42  ;;  %484 = vmatprep.subr.mxu1 %v563_v0 }
  0x3c   :  { %437 = vmatpush3.msra.mxu0 %v56_v43  ;;  %485 = vmatpush3.msra.mxu1 %v168_v48  ;;  %v303_v39 = vsub.s32 0, %v302_v38  ;;  %v307_v41 = vsub.s32 1, %v302_v38 }
  0x3d   :  { %160 = vmatmul.mubr.f32.vlgmr.msra.gmra.mxu0 %v54_v45  ;;  %486 = vmatprep.subr.mxu1 %v563_v0 }
  0x3e   :  { %375 = vmatprep.mubr.f32.mxu0 %v563_v0  ;;  %487 = vmatpush3.msra.mxu1 %v167_v49  ;;  %v304_v42 = vrot.slane %v299_v40, %v303_v39  ;;  %v308_v43 = vrot.slane %v299_v40, %v307_v41 }
  0x3f   :  { %488 = vmatprep.subr.mxu1 %v563_v0  ;;  %311 = vmatprep.subr.mxu0 %v298_v57  ;;  %v291_v0 = vld [vmem:[#allocation4 + $0xc0] sm:$0xff] }
  0x40   :  { %489 = vmatpush3.msra.mxu1 %v166_v50  ;;  %312 = vmatpush1.msra.mxu0 %v297_v58 }
  0x41   :  { %313 = vmatprep.subr.mxu0 %v296_v59 }
  0x42   :  { %314 = vmatpush1.msra.mxu0 %v295_v60 }
  0x43   :  { %315 = vmatprep.subr.mxu0 %v294_v61 }
  0x44   :  { %316 = vmatpush1.msra.mxu0 %v293_v62 }
  0x45   :  { %317 = vmatprep.subr.mxu0 %v292_v63 }
  0x46   :  { %318 = vmatpush1.msra.mxu0 %v291_v0 }
  0x47   :  { %319 = vmatprep.subr.mxu0 %v290_v1 }
  0x48   :  { %320 = vmatpush1.msra.mxu0 %v289_v2 }
  0x49   :  { %321 = vmatprep.subr.mxu0 %v288_v3 }
  0x4a   :  { %322 = vmatpush1.msra.mxu0 %v287_v4 }
  0x4b   :  { %323 = vmatprep.subr.mxu0 %v286_v5 }
  0x4c   :  { %324 = vmatpush1.msra.mxu0 %v285_v6 }
  0x4d   :  { %325 = vmatprep.subr.mxu0 %v284_v7 }
  0x4e   :  { %326 = vmatpush1.msra.mxu0 %v283_v8 }
  0x4f   :  { %327 = vmatprep.subr.mxu0 %v282_v9 }
  0x50   :  { %328 = vmatpush1.msra.mxu0 %v281_v10 }
  0x51   :  { %329 = vmatprep.subr.mxu0 %v280_v11 }
  0x52   :  { %330 = vmatpush1.msra.mxu0 %v279_v12 }
  0x53   :  { %331 = vmatprep.subr.mxu0 %v278_v13 }
  0x54   :  { %332 = vmatpush1.msra.mxu0 %v277_v14 }
  0x55   :  { %333 = vmatprep.subr.mxu0 %v276_v15 }
  0x56   :  { %334 = vmatpush1.msra.mxu0 %v275_v16 }
  0x57   :  { %335 = vmatprep.subr.mxu0 %v274_v17 }
  0x58   :  { %336 = vmatpush1.msra.mxu0 %v273_v18 }
  0x59   :  { %337 = vmatprep.subr.mxu0 %v272_v19 }
  0x5a   :  { %338 = vmatpush1.msra.mxu0 %v271_v20 }
  0x5b   :  { %339 = vmatprep.subr.mxu0 %v270_v21 }
  0x5c   :  { %340 = vmatpush1.msra.mxu0 %v269_v22 }
  0x5d   :  { %341 = vmatprep.subr.mxu0 %v268_v23 }
  0x5e   :  { %342 = vmatpush1.msra.mxu0 %v267_v24 }
  0xfd   :  { %v438_v51 = vpop.f32.mrf.mxu0 }
  0xff   :  { %v439_v53 = vpop.f32.mrf.mxu0 }
 0x100   :  { %v440_v54 = vadd.f32 %v439_v53, %v438_v51 }
 0x102   :  { %v686_v55 = vadd.f32 %v440_v54, %v402_v52 }
 0x104   :  { %v165_v56 = vmul.f32 %v686_v55, %v686_v55 }
 0x106   :  { %491 = vmatmul.mubr.f32.vlgmr.msra.gmra.mxu1 %v165_v56 }
 0x1c6   :  { %v248_v25 = vpop.f32.mrf.mxu1 }
 0x1c7   :  { %v249_v26 = vadd.f32 1.1920929e-07, %v248_v25 }
 0x1c8   :  { %v492_v27 = vpop.f32.mrf.mxu1 }
 0x1c9   :  { %501 = vrsqrt.f32 %v249_v26 }
 0x1d6   :  { %v502_v28 = vpop.eup %501 }
 0x1d7   :  { %v253_v30 = vmul.f32 %v502_v28, %v686_v55 }
 0x1d9   :  { %v261_v31 = vmul.f32 %v403_v29, %v253_v30 }
 0x1db   :  { %v263_v32 = vmul.f32 0.70710677, %v261_v31  ;;  %v262_v34 = vmul.f32 0.5, %v261_v31 }
 0x1dd   :  { %503 = verf.f32 %v263_v32 }
 0x1ea   :  { %v504_v33 = vpop.eup %503 }
 0x1eb   :  { %v265_v35 = vadd.f32 1.0, %v504_v33 }
 0x1ed   :  { %v266_v36 = vmul.f32 %v265_v35, %v262_v34 }
 0x1ef   :  { %376 = vmatmul.mubr.f32.vlgmr.msra.gmra.mxu0 %v266_v36 }
 0x2af   :  { %v377_v44 = vpop.f32.mrf.mxu0 }
 0x2b0   :  { %v378_v45 = vadd.f32 %v377_v44, %v304_v42 }
 0x2b1   :  { %v379_v46 = vpop.f32.mrf.mxu0 }
 0x2b2   :  { %v404_v47 = vmul.f32 -1.442695, %v378_v45  ;;  %v380_v48 = vadd.f32 %v379_v46, %v308_v43 }
 0x2b4   :  { %505 = vpow2.f32 %v404_v47  ;;  %v405_v49 = vmul.f32 -1.442695, %v380_v48 }
 0x2b6   :  { %507 = vpow2.f32 %v405_v49 }
 0x2c1   :  { %v506_v50 = vpop.eup %505 }
 0x2c2   :  { %v388_v51 = vadd.f32 1.0, %v506_v50 }
 0x2c3   :  { %v508_v52 = vpop.eup %507 }
 0x2c4   :  { %509 = vrcp.f32 %v388_v51  ;;  %v389_v53 = vadd.f32 1.0, %v508_v52 }
 0x2c6   :  { %511 = vrcp.f32 %v389_v53 }
 0x2d1   :  { %v510_v54 = vpop.eup %509 }
 0x2d2   :  { %394 = vst [vmem:[%s710_s7] sm:$0xff] %v510_v54 }
 0x2d3   :  { %v512_v55 = vpop.eup %511 }
 0x2d4   :  { %395 = vst [vmem:[%s710_s7 + $0x8] sm:$0xff] %v512_v55 }
 0x2d5   :  { %400 = vsyncpa [#allocation3], 1 }
 0x2d6   :  { %401 = vsyncpa [#allocation5], 1 }

</bundles_post_ra>
